<compile_context>
chip_gen: v5e
topology: v5e:2x2
jax: 0.10.0
libtpu: 0.0.40
codegen_flags: <defaults>
</compile_context>

<pallas_src>
import math

import jax
import jax.numpy as jnp
from jax.experimental import pallas as pl
from jax.experimental.pallas import tpu as pltpu

OUTPUT_BIT = 8
N_SHIFT = 15  # self.n in the PyTorch module


def _int_softmax_kernel(sf_ref, x_ref, out_ref):
    """sf_ref: SMEM (1,) scalar-prefetch scaling factor.
    x_ref: (block_m, N) input tile (any float dtype); out_ref: same shape."""
    sf = sf_ref[0]
    rcp_sf = 1.0 / sf                                    # scalar, once per tile

    # x_int = x / scaling_factor  ->  reciprocal multiply (see header note)
    x_int = x_ref[...].astype(jnp.float32) * rcp_sf
    x_int = x_int - jnp.max(x_int, axis=-1, keepdims=True)

    # ---- int_exp_shift ----
    # x_int = x_int + floor(x_int/2) - floor(x_int/2**4)  (exact pow2 multiplies)
    x_int = x_int + jnp.floor(x_int * 0.5) - jnp.floor(x_int * 0.0625)
    x0_int = jnp.floor(-1.0 / sf)                        # scalar, negative integer
    x_int = jnp.maximum(x_int, N_SHIFT * x0_int)

    # q = floor(x_int / x0_int) via reciprocal multiply + exact floor fix-up.
    # x0_int < 0 and x_int <= 0, so q is the largest integer with
    # q * x0_int >= x_int; correct the possible +/-1 error of the estimate.
    rcp_x0 = 1.0 / x0_int                                # scalar, once per tile
    q = jnp.floor(x_int * rcp_x0)
    q = q - (q * x0_int < x_int).astype(jnp.float32)            # too large -> -1
    q = q + ((q + 1.0) * x0_int >= x_int).astype(jnp.float32)   # too small -> +1

    r = x_int - x0_int * q
    exp_int = r * 0.5 - x0_int
    exp_int = jnp.maximum(jnp.floor(exp_int * jnp.exp2(N_SHIFT - q)), 0.0)

    # ---- normalization ----
    int32_max = jnp.float32(2.0 ** 31 - 1.0)     # rounds to 2**31, same as torch f32
    exp_int_sum = jnp.minimum(jnp.sum(exp_int, axis=-1, keepdims=True), int32_max)
    # Fold the exact power-of-two denominator into the per-row factor
    # (bit-exact: factor <= 2**16, so factor * 2**-24 is an exact scaling).
    factor = (jnp.floor(int32_max / exp_int_sum)
              * jnp.float32(2.0 ** -(31 - OUTPUT_BIT + 1)))
    exp_int = jnp.floor(exp_int * factor)

    out_scale = jnp.float32(1.0 / 2.0 ** (OUTPUT_BIT - 1))
    out_ref[...] = (exp_int * out_scale).astype(out_ref.dtype)


def _choose_block_m(m, n, in_dtype, out_dtype, vmem_budget_bytes=24 << 20):
    """Largest row tile fitting a conservative double-buffer VMEM budget,
    clamped so the 1-D grid has >= 8 steps (>= 4 per v7x TensorCore)."""
    in_b = jnp.dtype(in_dtype).itemsize
    out_b = jnp.dtype(out_dtype).itemsize
    # 2x-buffered input + 2x-buffered output + ~6 live f32 temporaries per row
    per_row = 2 * n * in_b + 2 * n * out_b + 6 * n * 4
    block_m = max(8, int(vmem_budget_bytes // per_row))
    block_m = min(block_m, 512)                 # honest cap for v7x's 64 MiB/TC VMEM
    if m >= 64:
        block_m = min(block_m, int(pl.cdiv(m, 8)))   # keep >= 8 grid steps
    if block_m >= m:
        return int(m)                           # single full-extent block (any m legal)
    return int(max(8, (block_m // 8) * 8))


def int_softmax(x, scaling_factor, *, block_m=None, out_dtype=jnp.bfloat16):
    """Pallas implementation of IntSoftmax.forward.

    Args:
      x: float array (any rank, any float dtype); softmax over the last axis.
      scaling_factor: scalar input quantization scale.
      block_m: optional row-tile override.
      out_dtype: output dtype (bf16 is lossless for these quantized values).
    Returns:
      (out, act_scaling_factor) matching the PyTorch module.
    """
    orig_shape = x.shape
    n = orig_shape[-1]
    m = math.prod(orig_shape[:-1]) if len(orig_shape) > 1 else 1
    x2 = x.reshape(m, n)                        # no dtype cast: kernel casts post-load

    if block_m is None:
        block_m = _choose_block_m(m, n, x2.dtype, out_dtype)
    block_m = min(block_m, m)

    grid_m = int(pl.cdiv(m, block_m))           # ragged edge rows handled by Pallas

    sf = jnp.asarray(scaling_factor, dtype=jnp.float32).reshape(1)

    grid_spec = pltpu.PrefetchScalarGridSpec(
        num_scalar_prefetch=1,
        grid=(grid_m,),
        in_specs=[pl.BlockSpec((block_m, n), lambda i, sf_ref: (i, 0))],
        out_specs=pl.BlockSpec((block_m, n), lambda i, sf_ref: (i, 0)),
    )

    out2 = pl.pallas_call(
        _int_softmax_kernel,
        grid_spec=grid_spec,
        out_shape=jax.ShapeDtypeStruct((m, n), out_dtype),
        compiler_params=pltpu.CompilerParams(
            dimension_semantics=("parallel",),
            vmem_limit_bytes=48 << 20,   # above 16/32 MiB scoped defaults, < v7x 64 MiB/TC
        ),
    )(sf, x2)

    act_scaling_factor = jnp.full((1,), 1.0 / 2.0 ** (OUTPUT_BIT - 1),
                                  dtype=jnp.float32)
    return out2.reshape(orig_shape), act_scaling_factor


def _int_softmax_ref(x, scaling_factor):
    """Pure-JAX reference mirroring the PyTorch code (for self-check)."""
    sf = jnp.float32(scaling_factor)
    x = x.astype(jnp.float32)
    x_int = x / sf
    x_int = x_int - jnp.max(x_int, axis=-1, keepdims=True)
    x_int = x_int + jnp.floor(x_int / 2.0) - jnp.floor(x_int / 2.0 ** 4)
    x0_int = jnp.floor(-1.0 / sf)
    x_int = jnp.maximum(x_int, N_SHIFT * x0_int)
    q = jnp.floor(x_int / x0_int)
    r = x_int - x0_int * q
    exp_int = r / 2.0 - x0_int
    exp_int = jnp.maximum(jnp.floor(exp_int * jnp.exp2(N_SHIFT - q)), 0.0)
    exp_int_sum = jnp.minimum(jnp.sum(exp_int, axis=-1, keepdims=True),
                              2.0 ** 31 - 1)
    factor = jnp.floor((2.0 ** 31 - 1) / exp_int_sum)
    exp_int = jnp.floor(exp_int * factor / 2.0 ** (31 - OUTPUT_BIT + 1))
    return exp_int * (1.0 / 2.0 ** (OUTPUT_BIT - 1))


if __name__ == "__main__":
    key = jax.random.PRNGKey(0)
    # attention-logit-like input: [batch=2, heads=4, seq_q=8, seq_k=32]
    x = jax.random.normal(key, (2, 4, 8, 32), dtype=jnp.float32) * 2.0
    scaling_factor = 0.05  # per-tensor input quantization scale

    out, act_sf = int_softmax(x, scaling_factor)
    out = jax.block_until_ready(out)

    ref = _int_softmax_ref(x, scaling_factor)
    assert out.shape == x.shape

    lsb = 1.0 / 2.0 ** (OUTPUT_BIT - 1)
    diff = jnp.abs(out.astype(jnp.float32) - ref)
    max_diff = float(jnp.max(diff))
    mismatch_frac = float(jnp.mean(diff > 1e-6))
    # The kernel uses x * (1/sf) instead of x / sf (per perf review); this can
    # flip a downstream floor at ULP boundaries, so allow <= 2 output LSBs on a
    # tiny fraction of elements.  Everything else is bit-exact vs the reference.
    assert max_diff <= 2.0 * lsb + 1e-6, f"max diff {max_diff} too large"
    assert mismatch_frac <= 0.01, f"mismatch fraction {mismatch_frac} too large"
    assert float(act_sf[0]) == lsb

    print("KERNEL_OK")
</pallas_src>

<mosaic_0001>
module attributes {stable_mosaic.version = 11 : i64} {
  func.func @_int_softmax_kernel(%arg0: i32, %arg1: memref<1xf32, #tpu.memory_space<smem>>, %arg2: memref<8x32xf32, #tpu.memory_space<vmem>>, %arg3: memref<8x32xbf16, #tpu.memory_space<vmem>>) attributes {dimension_semantics = [#tpu.dimension_semantics<parallel>], iteration_bounds = array<i64: 8>, scalar_prefetch = 1 : i64, scratch_operands = 0 : i64, tpu.core_type = #tpu.core_type<tc>, window_params = [{transform_indices = @transform_0, window_bounds = array<i64: 8, 32>}, {transform_indices = @transform_1, window_bounds = array<i64: 8, 32>}]} {
    %c0 = arith.constant 0 : index
    %0 = memref.load %arg1[%c0] : memref<1xf32, #tpu.memory_space<smem>>
    %cst = arith.constant 1.000000e+00 : f32
    %1 = arith.divf %cst, %0 : f32
    %c0_0 = arith.constant 0 : index
    %c0_1 = arith.constant 0 : index
    %2 = vector.load %arg2[%c0_0, %c0_1] : memref<8x32xf32, #tpu.memory_space<vmem>>, vector<8x32xf32>
    %3 = vector.broadcast %1 : f32 to vector<8x32xf32>
    %4 = arith.mulf %2, %3 : vector<8x32xf32>
    %cst_2 = arith.constant dense<0xFF800000> : vector<8xf32>
    %5 = vector.multi_reduction <maximumf>, %4, %cst_2 [1] : vector<8x32xf32> to vector<8xf32>
    %6 = vector.shape_cast %5 : vector<8xf32> to vector<8x1xf32>
    %7 = vector.broadcast %6 : vector<8x1xf32> to vector<8x32xf32>
    %8 = arith.subf %4, %7 : vector<8x32xf32>
    %cst_3 = arith.constant 5.000000e-01 : f32
    %9 = vector.broadcast %cst_3 : f32 to vector<8x32xf32>
    %10 = arith.mulf %8, %9 : vector<8x32xf32>
    %11 = math.floor %10 : vector<8x32xf32>
    %12 = arith.addf %8, %11 : vector<8x32xf32>
    %cst_4 = arith.constant 6.250000e-02 : f32
    %13 = vector.broadcast %cst_4 : f32 to vector<8x32xf32>
    %14 = arith.mulf %8, %13 : vector<8x32xf32>
    %15 = math.floor %14 : vector<8x32xf32>
    %16 = arith.subf %12, %15 : vector<8x32xf32>
    %cst_5 = arith.constant -1.000000e+00 : f32
    %17 = arith.divf %cst_5, %0 : f32
    %18 = math.floor %17 : f32
    %cst_6 = arith.constant 1.500000e+01 : f32
    %19 = arith.mulf %cst_6, %18 : f32
    %20 = vector.broadcast %19 : f32 to vector<8x32xf32>
    %21 = arith.maximumf %16, %20 : vector<8x32xf32>
    %cst_7 = arith.constant 1.000000e+00 : f32
    %22 = arith.divf %cst_7, %18 : f32
    %23 = vector.broadcast %22 : f32 to vector<8x32xf32>
    %24 = arith.mulf %21, %23 : vector<8x32xf32>
    %25 = math.floor %24 : vector<8x32xf32>
    %26 = vector.broadcast %18 : f32 to vector<8x32xf32>
    %27 = arith.mulf %25, %26 : vector<8x32xf32>
    %28 = arith.cmpf olt, %27, %21 : vector<8x32xf32>
    %29 = arith.extui %28 : vector<8x32xi1> to vector<8x32xi32>
    %30 = arith.sitofp %29 : vector<8x32xi32> to vector<8x32xf32>
    %31 = arith.subf %25, %30 : vector<8x32xf32>
    %cst_8 = arith.constant 1.000000e+00 : f32
    %32 = vector.broadcast %cst_8 : f32 to vector<8x32xf32>
    %33 = arith.addf %31, %32 : vector<8x32xf32>
    %34 = vector.broadcast %18 : f32 to vector<8x32xf32>
    %35 = arith.mulf %33, %34 : vector<8x32xf32>
    %36 = arith.cmpf oge, %35, %21 : vector<8x32xf32>
    %37 = arith.extui %36 : vector<8x32xi1> to vector<8x32xi32>
    %38 = arith.sitofp %37 : vector<8x32xi32> to vector<8x32xf32>
    %39 = arith.addf %31, %38 : vector<8x32xf32>
    %40 = vector.broadcast %18 : f32 to vector<8x32xf32>
    %41 = arith.mulf %40, %39 : vector<8x32xf32>
    %42 = arith.subf %21, %41 : vector<8x32xf32>
    %cst_9 = arith.constant 5.000000e-01 : f32
    %43 = vector.broadcast %cst_9 : f32 to vector<8x32xf32>
    %44 = arith.mulf %42, %43 : vector<8x32xf32>
    %45 = vector.broadcast %18 : f32 to vector<8x32xf32>
    %46 = arith.subf %44, %45 : vector<8x32xf32>
    %cst_10 = arith.constant 1.500000e+01 : f32
    %47 = vector.broadcast %cst_10 : f32 to vector<8x32xf32>
    %48 = arith.subf %47, %39 : vector<8x32xf32>
    %49 = math.exp2 %48 : vector<8x32xf32>
    %50 = arith.mulf %46, %49 : vector<8x32xf32>
    %51 = math.floor %50 : vector<8x32xf32>
    %cst_11 = arith.constant 0.000000e+00 : f32
    %52 = vector.broadcast %cst_11 : f32 to vector<8x32xf32>
    %53 = arith.maximumf %51, %52 : vector<8x32xf32>
    %cst_12 = arith.constant dense<0.000000e+00> : vector<8xf32>
    %54 = vector.multi_reduction <add>, %53, %cst_12 [1] : vector<8x32xf32> to vector<8xf32>
    %55 = vector.shape_cast %54 : vector<8xf32> to vector<8x1xf32>
    %cst_13 = arith.constant 2.14748365E+9 : f32
    %56 = vector.broadcast %cst_13 : f32 to vector<8x1xf32>
    %57 = arith.minimumf %55, %56 : vector<8x1xf32>
    %cst_14 = arith.constant 2.14748365E+9 : f32
    %58 = vector.broadcast %cst_14 : f32 to vector<8x1xf32>
    %59 = arith.divf %58, %57 : vector<8x1xf32>
    %60 = math.floor %59 : vector<8x1xf32>
    %cst_15 = arith.constant 5.96046448E-8 : f32
    %61 = vector.broadcast %cst_15 : f32 to vector<8x1xf32>
    %62 = arith.mulf %60, %61 : vector<8x1xf32>
    %63 = vector.broadcast %62 : vector<8x1xf32> to vector<8x32xf32>
    %64 = arith.mulf %53, %63 : vector<8x32xf32>
    %65 = math.floor %64 : vector<8x32xf32>
    %cst_16 = arith.constant 7.812500e-03 : f32
    %66 = vector.broadcast %cst_16 : f32 to vector<8x32xf32>
    %67 = arith.mulf %65, %66 : vector<8x32xf32>
    %68 = arith.truncf %67 : vector<8x32xf32> to vector<8x32xbf16>
    %c0_17 = arith.constant 0 : index
    %c0_18 = arith.constant 0 : index
    %69 = vector.load %arg3[%c0_17, %c0_18] : memref<8x32xbf16, #tpu.memory_space<vmem>>, vector<8x32xbf16>
    tpu.vector_store %arg3[%c0_17, %c0_18], %68 {strides = array<i32>} : memref<8x32xbf16, #tpu.memory_space<vmem>>, vector<8x32xbf16>,
    return
  }
  func.func @transform_0(%arg0: i32, %arg1: memref<1xf32, #tpu.memory_space<smem>>) -> (i32, i32) {
    %c0_i32 = arith.constant 0 : i32
    %c0_i32_0 = arith.constant 0 : i32
    return %arg0, %c0_i32 : i32, i32
  }
  func.func @transform_1(%arg0: i32, %arg1: memref<1xf32, #tpu.memory_space<smem>>) -> (i32, i32) {
    %c0_i32 = arith.constant 0 : i32
    %c0_i32_0 = arith.constant 0 : i32
    return %arg0, %c0_i32 : i32, i32
  }
}

</mosaic_0001>

<bundles_post_ra>
// kernel: tpu_custom_call.1
= control target key start
LH: loop header
LB: loop body
LE: loop exit
PB: predicated region body
PF: predicated region fallthrough
CT: control target
= control target key end

     0   :  { %s345_s11 = smov 0   ;;  %s372_s0 = inlined_call_operand.<no memory space> [shape: f32[1], index: 0, kind: input, shape index: {}]   ;;  %s373_s1 = inlined_call_operand.vmem [shape: f32[64,32], index: 1, kind: input, shape index: {}]   ;;  %s374_s2 = inlined_call_operand.vmem [shape: bf16[64,32], index: 2, kind: output, shape index: {}]  }
   0x1   :  { %7 = sst [smem:[#allocation3]] %s372_s0 }
   0x2 LB: > { %s286_s12 = sadd.s32 4294967295, %s324_s11   ;;  %p290_p0 = scmp.ge.s32.totalorder %s324_s11, 1  ;;  %s324_s11 = sphi %s345_s11, %s13_s11  }
   0x3   : > { %p88_p1 = scmp.lt.s32.totalorder %s324_s11, 9 }
   0x5   : > { %p89_p2 = pnand %p290_p0, %p88_p1 }
   0x6   : > { %s114_s13 = sld [smem:[#allocation3]] (!%p89_p2)  ;;  %p106_p3 = scmp.lt.s32.totalorder (!%p89_p2), %s286_s12, 7 }
   0x7   : > { %92 = sbr.rel (%p89_p2) target bundleno = 396 (0x18c), region = 24 }
   0xc   : > { %v115_v0 = vstv %s114_s13  ;;  %s376_s12 = smov (!%p106_p3, %s286_s12), 7  ;;  %vm134_vm4 = vcmask 261120   ;;  %v326_v40 = vmov 0.0   ;;  %vm231_vm15 = vcmask 257024  }
   0xd   : > { %310 = vrcp.f32 %v115_v0  ;;  %v127_v3 = vand.u32 2147483648, %v115_v0  ;;  %vm121_vm0 = vweird.f32 %v115_v0  ;;  %v125_v5 = vand.u32 2147483647, %v115_v0  ;;  %s291_s0 = sshll.u32 %s376_s12, 3  ;;  %s292_s22 = sshll.u32 %s376_s12, 2 }
   0xe   : > { %s109_s16 = scalar_lea.vmem %s373_s1, %s291_s0  ;;  %s113_s25 = scalar_lea.vmem %s374_s2, %s292_s22 }
   0xf   : > { %v128_v7 = vor.u32 1.1754944e-38, %v127_v3  ;;  %vm126_vm3 = vcmp.eq.f32.partialorder %v125_v5, 8.507059e+37  ;;  %v131_v11 = vld [vmem:[%s109_s16] sm:$0xff] }
  0x13   : > { %v311_v1 = vpop.eup %310 }
  0x14   : > { %v117_v2 = vmul.f32 %v311_v1, %v115_v0  ;;  %vm122_vm1 = vweird.f32 %v311_v1 }
  0x15   : > { %vm123_vm2 = vmor %vm121_vm0, %vm122_vm1 }
  0x16   : > { %v118_v4 = vsub.f32 1.0, %v117_v2 }
  0x18   : > { %v119_v6 = vmul.f32 %v311_v1, %v118_v4 }
  0x1a   : > { %v120_v8 = vadd.f32 %v311_v1, %v119_v6 }
  0x1c   : > { %v124_v9 = vsel %vm123_vm2, %v311_v1, %v120_v8 }
  0x1d   : > { %v129_v10 = vsel %vm126_vm3, %v128_v7, %v124_v9 }
  0x1e   : > { %297 = vpush %v129_v10 }
  0x4f   : > { %s298_s17 = spop %297 }
  0x50   : > { %v132_v12 = vstv %s298_s17  ;;  %s161_s18 = smul.f32 -1.0, %s298_s17 }
  0x51   : > { %v133_v13 = vmul.f32 %v132_v12, %v131_v11 }
  0x52   : > { %s359_s19 = sfloor.f32 %s161_s18 }
  0x53   : > { %v166_v14 = vstv %s359_s19  ;;  %v135_v15 = vsel %vm134_vm4, %v133_v13, -inf  ;;  %s163_s20 = smul.f32 15.0, %s359_s19 }
  0x54   : > { %312 = vrcp.f32 %v166_v14  ;;  %136 = vmax.xlane.f32.xlu0 %v135_v15  ;;  %v178_v19 = vand.u32 2147483648, %v166_v14  ;;  %v176_v21 = vand.u32 2147483647, %v166_v14  ;;  %vm172_vm6 = vweird.f32 %v166_v14 }
  0x55   : > { %v164_v34 = vstv %s163_s20 }
  0x56   : > { %v179_v23 = vor.u32 1.1754944e-38, %v178_v19  ;;  %vm177_vm8 = vcmp.eq.f32.partialorder %v176_v21, 8.507059e+37 }
  0x5a   : > { %v313_v16 = vpop.eup %312 }
  0x5b   : > { %v168_v17 = vmul.f32 %v313_v16, %v166_v14  ;;  %vm173_vm5 = vweird.f32 %v313_v16 }
  0x5c   : > { %vm174_vm7 = vmor %vm172_vm6, %vm173_vm5 }
  0x5d   : > { %v169_v18 = vsub.f32 1.0, %v168_v17 }
  0x5f   : > { %v170_v20 = vmul.f32 %v313_v16, %v169_v18 }
  0x61   : > { %v171_v22 = vadd.f32 %v313_v16, %v170_v20 }
  0x63   : > { %v175_v24 = vsel %vm174_vm7, %v313_v16, %v171_v22 }
  0x64   : > { %v180_v25 = vsel %vm177_vm8, %v179_v23, %v175_v24 }
  0x65   : > { %299 = vpush %v180_v25 }
  0x96   : > { %s300_s21 = spop %299 }
  0x97   : > { %v182_v36 = vstv %s300_s21 }
  0xc7   : > { %v137_v26 = vpop.xlane.xlu0 %136 }
  0xc8   : > { %v138_v27 = vsub.f32 %v133_v13, %v137_v26 }
  0xca   : > { %v139_v28 = vmul.f32 0.5, %v138_v27  ;;  %v142_v29 = vmul.f32 0.0625, %v138_v27 }
  0xcc   : > { %v140_v30 = vfloor.f32 %v139_v28  ;;  %v143_v32 = vfloor.f32 %v142_v29 }
  0xce   : > { %v141_v31 = vadd.f32 %v140_v30, %v138_v27 }
  0xd0   : > { %v144_v33 = vsub.f32 %v141_v31, %v143_v32 }
  0xd2   : > { %v165_v35 = vmax.f32 %v144_v33, %v164_v34 }
  0xd4   : > { %v183_v37 = vmul.f32 %v182_v36, %v165_v35 }
  0xd6   : > { %v184_v38 = vfloor.f32 %v183_v37 }
  0xd8   : > { %v186_v39 = vmul.f32 %v184_v38, %v166_v14 }
  0xda   : > { %vm187_vm9 = vcmp.lt.f32.partialorder %v186_v39, %v165_v35 }
  0xdb   : > { %v293_v41 = vsel %vm187_vm9, 1.0, %v326_v40 }
  0xdc   : > { %v190_v42 = vsub.f32 %v184_v38, %v293_v41 }
  0xde   : > { %v191_v43 = vadd.f32 1.0, %v190_v42 }
  0xe0   : > { %v192_v44 = vmul.f32 %v191_v43, %v166_v14 }
  0xe2   : > { %vm193_vm10 = vcmp.ge.f32.partialorder %v192_v44, %v165_v35 }
  0xe3   : > { %v294_v45 = vsel %vm193_vm10, 1.0, %v326_v40 }
  0xe4   : > { %v196_v46 = vadd.f32 %v294_v45, %v190_v42 }
  0xe6   : > { %v197_v47 = vmul.f32 %v196_v46, %v166_v14  ;;  %v201_v48 = vsub.f32 15.0, %v196_v46 }
  0xe8   : > { %v198_v49 = vsub.f32 %v165_v35, %v197_v47  ;;  %314 = vpow2.f32 %v201_v48 }
  0xea   : > { %v199_v50 = vmul.f32 0.5, %v198_v49 }
  0xec   : > { %v200_v51 = vsub.f32 %v199_v50, %v166_v14 }
  0xee   : > { %v315_v52 = vpop.eup %314 }
  0xef   : > { %v203_v53 = vmul.f32 %v315_v52, %v200_v51 }
  0xf1   : > { %v204_v54 = vfloor.f32 %v203_v53 }
  0xf3   : > { %v205_v55 = vmax.f32 %v204_v54, 0.0 }
  0xf5   : > { %v206_v56 = vsel %vm134_vm4, %v205_v55, 0.0 }
  0xf6   : > { %207 = vadd.xlane.f32.xlu0 %v206_v56 }
 0x169   : > { %v208_v57 = vpop.xlane.xlu0 %207 }
 0x16a   : > { %v209_v58 = vmin.f32 %v208_v57, 2.1474836e+09 }
 0x16c   : > { %316 = vrcp.f32 %v209_v58  ;;  %v221_v62 = vand.u32 2147483648, %v209_v58  ;;  %v219_v0 = vand.u32 2147483647, %v209_v58  ;;  %vm215_vm12 = vweird.f32 %v209_v58 }
 0x16e   : > { %v222_v2 = vor.u32 1.1754944e-38, %v221_v62  ;;  %vm220_vm14 = vcmp.eq.f32.partialorder %v219_v0, 8.507059e+37 }
 0x172   : > { %v317_v59 = vpop.eup %316 }
 0x173   : > { %v211_v60 = vmul.f32 %v317_v59, %v209_v58  ;;  %vm216_vm11 = vweird.f32 %v317_v59 }
 0x174   : > { %vm217_vm13 = vmor %vm215_vm12, %vm216_vm11 }
 0x175   : > { %v212_v61 = vsub.f32 1.0, %v211_v60 }
 0x177   : > { %v213_v63 = vmul.f32 %v317_v59, %v212_v61 }
 0x179   : > { %v214_v1 = vadd.f32 %v317_v59, %v213_v63 }
 0x17b   : > { %v218_v3 = vsel %vm217_vm13, %v317_v59, %v214_v1 }
 0x17c   : > { %v223_v4 = vsel %vm220_vm14, %v222_v2, %v218_v3 }
 0x17d   : > { %v224_v5 = vmul.f32 2.1474836e+09, %v223_v4 }
 0x17f   : > { %v225_v6 = vfloor.f32 %v224_v5 }
 0x181   : > { %v226_v7 = vmul.f32 5.9604645e-08, %v225_v6 }
 0x183   : > { %v227_v8 = vmul.f32 %v226_v7, %v205_v55 }
 0x185   : > { %v228_v9 = vfloor.f32 %v227_v8 }
 0x187   : > { %v229_v10 = vmul.f32 0.0078125, %v228_v9 }
 0x189   : > { %v230_v11 = vpack.c.bf16 %v229_v10, %v229_v10 }
 0x18b   : > { %232 = vst.msk [vmem:[%s113_s25] sm:$0xf] %vm231_vm15, %v230_v11 }
 0x18c PF: > { %s13_s11 = sadd.s32 1, %s324_s11  }
 0x18d   : > { %p10_p4 = scmp.ge.s32.totalorder %s13_s11, 10  }
 0x18f   :  { %12 = sbr.rel (!%p10_p4) target bundleno = 2 (0x2), region = 54 }

</bundles_post_ra>
